<compile_context>
chip_gen: v7x
topology: tpu7x:2x2x1
jax: 0.10.0
libtpu: 0.0.40
codegen_flags: <defaults>
</compile_context>

<pallas_src>
import jax
import jax.numpy as jnp
from jax.experimental import pallas as pl
from jax.experimental.pallas import tpu as pltpu

IN_DIM = 768
HID_DIM = 256
OUT_DIM = 10
DEFAULT_TILE_B = 2048   # bf16 x double-buffer = 6.3 MiB; total ~10 MiB VMEM


def mlp_softmax_kernel(x_ref, w1_ref, b1_ref, w2_ref, b2_ref, o_ref):
    # fc1: bf16 inputs, f32 accumulation on the MXU.
    h = jnp.dot(x_ref[...], w1_ref[...], preferred_element_type=jnp.float32)
    h = jnp.maximum(h + b1_ref[...], 0.0)

    # fc2: tiny (256x10), kept in f32.
    logits = jnp.dot(h, w2_ref[...], preferred_element_type=jnp.float32)
    logits = logits + b2_ref[...]

    # Numerically-stable softmax over the (narrow) class dim, exact division.
    m = jnp.max(logits, axis=-1, keepdims=True)
    e = jnp.exp(logits - m)
    denom = jnp.sum(e, axis=-1, keepdims=True)
    o_ref[...] = (e / denom).astype(o_ref.dtype)


def _round_up(n, m):
    return ((n + m - 1) // m) * m


def small_model_forward(x, w1, b1, w2, b2, *, tile_b=DEFAULT_TILE_B):
    """x: [B, 768]. w1: [256, 768], b1: [256], w2: [10, 256], b2: [10]
    (PyTorch nn.Linear layout). Returns [B, 10] softmax probabilities (f32)."""
    batch = x.shape[0]

    # --- host-side (one-off) parameter prep -------------------------------
    x16 = x.astype(jnp.bfloat16)                       # dominant HBM stream
    w1t = jnp.transpose(w1).astype(jnp.bfloat16)       # [768, 256]
    w2t = jnp.transpose(w2).astype(jnp.float32)        # [256, 10]
    b1r = b1.reshape(1, HID_DIM).astype(jnp.float32)
    b2r = b2.reshape(1, OUT_DIM).astype(jnp.float32)

    # --- tile sizing -------------------------------------------------------
    # Cap at the (8-row rounded) batch; prefer >=2 grid steps so the
    # "parallel" batch axis can use both TensorCores on v7x.
    tile_b = max(8, min(tile_b, _round_up(batch, 8)))
    if batch > 8:
        tile_b = max(8, min(tile_b, _round_up(pl.cdiv(batch, 2), 8)))

    grid = (pl.cdiv(batch, tile_b),)

    cost = pl.CostEstimate(
        flops=2 * batch * IN_DIM * HID_DIM + 2 * batch * HID_DIM * OUT_DIM,
        transcendentals=batch * OUT_DIM,
        bytes_accessed=(2 * batch * IN_DIM          # x (bf16)
                        + 2 * IN_DIM * HID_DIM      # W1 (bf16)
                        + 4 * HID_DIM               # b1
                        + 4 * HID_DIM * OUT_DIM     # W2
                        + 4 * OUT_DIM               # b2
                        + 4 * batch * OUT_DIM),     # out
    )

    return pl.pallas_call(
        mlp_softmax_kernel,
        out_shape=jax.ShapeDtypeStruct((batch, OUT_DIM), jnp.float32),
        grid=grid,
        in_specs=[
            pl.BlockSpec((tile_b, IN_DIM), lambda i: (i, 0)),            # x tile
            pl.BlockSpec((IN_DIM, HID_DIM), lambda i: (0, 0),
                         pipeline_mode=pl.Buffered(1)),                  # W1^T resident
            pl.BlockSpec((1, HID_DIM), lambda i: (0, 0),
                         pipeline_mode=pl.Buffered(1)),                  # b1 resident
            pl.BlockSpec((HID_DIM, OUT_DIM), lambda i: (0, 0),
                         pipeline_mode=pl.Buffered(1)),                  # W2^T resident
            pl.BlockSpec((1, OUT_DIM), lambda i: (0, 0),
                         pipeline_mode=pl.Buffered(1)),                  # b2 resident
        ],
        out_specs=pl.BlockSpec((tile_b, OUT_DIM), lambda i: (i, 0)),
        compiler_params=pltpu.CompilerParams(
            dimension_semantics=("parallel",),
            vmem_limit_bytes=48 << 20,   # headroom above the scoped defaults
        ),
        cost_estimate=cost,
    )(x16, w1t, b1r, w2t, b2r)


if __name__ == "__main__":
    key = jax.random.PRNGKey(0)
    k_x, k_w1, k_b1, k_w2, k_b2 = jax.random.split(key, 5)

    batch = 8
    x = jax.random.normal(k_x, (batch, IN_DIM), dtype=jnp.float32)

    # Deterministic init mirroring nn.Linear's uniform(-1/sqrt(fan_in), +1/sqrt(fan_in)).
    bound1 = 1.0 / (IN_DIM ** 0.5)
    w1 = jax.random.uniform(k_w1, (HID_DIM, IN_DIM), jnp.float32, -bound1, bound1)
    b1 = jax.random.uniform(k_b1, (HID_DIM,), jnp.float32, -bound1, bound1)
    bound2 = 1.0 / (HID_DIM ** 0.5)
    w2 = jax.random.uniform(k_w2, (OUT_DIM, HID_DIM), jnp.float32, -bound2, bound2)
    b2 = jax.random.uniform(k_b2, (OUT_DIM,), jnp.float32, -bound2, bound2)

    out = small_model_forward(x, w1, b1, w2, b2)
    out = jax.block_until_ready(out)

    assert out.shape == (batch, OUT_DIM)

    # Rows must sum to 1 (exact division in the kernel).
    assert jnp.allclose(jnp.sum(out, axis=-1), 1.0, atol=1e-5)

    # Tight check vs a reference that uses the same bf16-quantized x / W1
    # (isolates kernel math from the input cast).
    xq = x.astype(jnp.bfloat16).astype(jnp.float32)
    w1q = w1.astype(jnp.bfloat16).astype(jnp.float32)
    ref_q = jax.nn.softmax(
        jnp.maximum(xq @ w1q.T + b1, 0.0) @ w2.T + b2, axis=-1)
    assert jnp.allclose(out, ref_q, atol=2e-3, rtol=2e-3)

    # Loose check vs the full-f32 PyTorch-equivalent reference
    # (bf16 input quantization costs ~1e-3 on the probabilities).
    ref_f32 = jax.nn.softmax(
        jnp.maximum(x @ w1.T + b1, 0.0) @ w2.T + b2, axis=-1)
    assert jnp.allclose(out, ref_f32, atol=2e-2, rtol=2e-2)

    print("KERNEL_OK")
</pallas_src>

<mosaic_0001>
module attributes {stable_mosaic.version = 11 : i64} {
  func.func @mlp_softmax_kernel(%arg0: i32, %arg1: memref<8x768xbf16, #tpu.memory_space<vmem>>, %arg2: memref<768x256xbf16, #tpu.memory_space<vmem>>, %arg3: memref<1x256xf32, #tpu.memory_space<vmem>>, %arg4: memref<256x10xf32, #tpu.memory_space<vmem>>, %arg5: memref<1x10xf32, #tpu.memory_space<vmem>>, %arg6: memref<8x10xf32, #tpu.memory_space<vmem>>) attributes {dimension_semantics = [#tpu.dimension_semantics<parallel>], iteration_bounds = array<i64: 1>, scalar_prefetch = 0 : i64, scratch_operands = 0 : i64, tpu.core_type = #tpu.core_type<tc>, window_params = [{transform_indices = @transform_0, window_bounds = array<i64: 8, 768>}, {pipeline_mode = #tpu.pipeline_mode<synchronous>, transform_indices = @transform_1, window_bounds = array<i64: 768, 256>}, {pipeline_mode = #tpu.pipeline_mode<synchronous>, transform_indices = @transform_2, window_bounds = array<i64: 1, 256>}, {pipeline_mode = #tpu.pipeline_mode<synchronous>, transform_indices = @transform_3, window_bounds = array<i64: 256, 10>}, {pipeline_mode = #tpu.pipeline_mode<synchronous>, transform_indices = @transform_4, window_bounds = array<i64: 1, 10>}, {transform_indices = @transform_5, window_bounds = array<i64: 8, 10>}]} {
    %c0 = arith.constant 0 : index
    %c0_0 = arith.constant 0 : index
    %0 = vector.load %arg1[%c0, %c0_0] : memref<8x768xbf16, #tpu.memory_space<vmem>>, vector<8x768xbf16>
    %c0_1 = arith.constant 0 : index
    %c0_2 = arith.constant 0 : index
    %1 = vector.load %arg2[%c0_1, %c0_2] : memref<768x256xbf16, #tpu.memory_space<vmem>>, vector<768x256xbf16>
    %cst = arith.constant dense<0.000000e+00> : vector<8x256xf32>
    %2 = tpu.matmul %0, %1, %cst {dimension_numbers = #tpu.dot_dimension_numbers<[1], [0], [0], [1], [0, 0, 1, 1], [], []>} : vector<8x768xbf16>, vector<768x256xbf16>, vector<8x256xf32> -> vector<8x256xf32>
    %c0_3 = arith.constant 0 : index
    %c0_4 = arith.constant 0 : index
    %3 = vector.load %arg3[%c0_3, %c0_4] : memref<1x256xf32, #tpu.memory_space<vmem>>, vector<1x256xf32>
    %4 = vector.broadcast %3 : vector<1x256xf32> to vector<8x256xf32>
    %5 = arith.addf %2, %4 : vector<8x256xf32>
    %cst_5 = arith.constant 0.000000e+00 : f32
    %6 = vector.broadcast %cst_5 : f32 to vector<8x256xf32>
    %7 = arith.maximumf %5, %6 : vector<8x256xf32>
    %c0_6 = arith.constant 0 : index
    %c0_7 = arith.constant 0 : index
    %8 = vector.load %arg4[%c0_6, %c0_7] : memref<256x10xf32, #tpu.memory_space<vmem>>, vector<256x10xf32>
    %cst_8 = arith.constant dense<0.000000e+00> : vector<8x10xf32>
    %9 = tpu.matmul %7, %8, %cst_8 {dimension_numbers = #tpu.dot_dimension_numbers<[1], [0], [0], [1], [0, 0, 1, 1], [], []>} : vector<8x256xf32>, vector<256x10xf32>, vector<8x10xf32> -> vector<8x10xf32>
    %c0_9 = arith.constant 0 : index
    %c0_10 = arith.constant 0 : index
    %10 = vector.load %arg5[%c0_9, %c0_10] : memref<1x10xf32, #tpu.memory_space<vmem>>, vector<1x10xf32>
    %11 = vector.broadcast %10 : vector<1x10xf32> to vector<8x10xf32>
    %12 = arith.addf %9, %11 : vector<8x10xf32>
    %cst_11 = arith.constant dense<0xFF800000> : vector<8xf32>
    %13 = vector.multi_reduction <maximumf>, %12, %cst_11 [1] : vector<8x10xf32> to vector<8xf32>
    %14 = vector.shape_cast %13 : vector<8xf32> to vector<8x1xf32>
    %15 = vector.broadcast %14 : vector<8x1xf32> to vector<8x10xf32>
    %16 = arith.subf %12, %15 : vector<8x10xf32>
    %17 = math.exp %16 : vector<8x10xf32>
    %cst_12 = arith.constant dense<0.000000e+00> : vector<8xf32>
    %18 = vector.multi_reduction <add>, %17, %cst_12 [1] : vector<8x10xf32> to vector<8xf32>
    %19 = vector.shape_cast %18 : vector<8xf32> to vector<8x1xf32>
    %20 = vector.broadcast %19 : vector<8x1xf32> to vector<8x10xf32>
    %21 = arith.divf %17, %20 : vector<8x10xf32>
    %c0_13 = arith.constant 0 : index
    %c0_14 = arith.constant 0 : index
    %22 = vector.load %arg6[%c0_13, %c0_14] : memref<8x10xf32, #tpu.memory_space<vmem>>, vector<8x10xf32>
    tpu.vector_store %arg6[%c0_13, %c0_14], %21 {strides = array<i32>} : memref<8x10xf32, #tpu.memory_space<vmem>>, vector<8x10xf32>,
    return
  }
  func.func @transform_0(%arg0: i32) -> (i32, i32) {
    %c0_i32 = arith.constant 0 : i32
    %c0_i32_0 = arith.constant 0 : i32
    return %arg0, %c0_i32 : i32, i32
  }
  func.func @transform_1(%arg0: i32) -> (i32, i32) {
    %c0_i32 = arith.constant 0 : i32
    %c0_i32_0 = arith.constant 0 : i32
    %c0_i32_1 = arith.constant 0 : i32
    return %c0_i32, %c0_i32_0 : i32, i32
  }
  func.func @transform_2(%arg0: i32) -> (i32, i32) {
    %c0_i32 = arith.constant 0 : i32
    %c0_i32_0 = arith.constant 0 : i32
    %c0_i32_1 = arith.constant 0 : i32
    return %c0_i32, %c0_i32_0 : i32, i32
  }
  func.func @transform_3(%arg0: i32) -> (i32, i32) {
    %c0_i32 = arith.constant 0 : i32
    %c0_i32_0 = arith.constant 0 : i32
    %c0_i32_1 = arith.constant 0 : i32
    return %c0_i32, %c0_i32_0 : i32, i32
  }
  func.func @transform_4(%arg0: i32) -> (i32, i32) {
    %c0_i32 = arith.constant 0 : i32
    %c0_i32_0 = arith.constant 0 : i32
    %c0_i32_1 = arith.constant 0 : i32
    return %c0_i32, %c0_i32_0 : i32, i32
  }
  func.func @transform_5(%arg0: i32) -> (i32, i32) {
    %c0_i32 = arith.constant 0 : i32
    %c0_i32_0 = arith.constant 0 : i32
    return %arg0, %c0_i32 : i32, i32
  }
}

</mosaic_0001>

<bundles_post_ra>
// kernel: tpu_custom_call.1
= control target key start
LH: loop header
LB: loop body
LE: loop exit
PB: predicated region body
PF: predicated region fallthrough
CT: control target
= control target key end

     0   :  { %10 = vsyncpa [#allocation3], 0  ;;  %s1477_s0 = inlined_call_operand.vmem [shape: bf16[8,768], index: 0, kind: input, shape index: {}]   ;;  %s1478_s1 = inlined_call_operand.hbm [shape: bf16[768,256], index: 1, kind: input, shape index: {}]   ;;  %s1479_s2 = inlined_call_operand.vmem [shape: f32[1,256], index: 2, kind: input, shape index: {}]   ;;  %s1480_s3 = inlined_call_operand.vmem [shape: f32[256,10], index: 3, kind: input, shape index: {}]   ;;  %s1481_s4 = inlined_call_operand.vmem [shape: f32[1,10], index: 4, kind: input, shape index: {}]   ;;  %s1482_s5 = inlined_call_operand.hbm [shape: f32[8,10], index: 5, kind: output, shape index: {}]  }
   0x1   :  { %11 = vsyncpa [#allocation4], 0  ;;  %s1293_s18 = smov [#allocation2]   ;;  %s1245_s22 = scalar_lea.hbm %s1478_s1, 12288 }
   0x2   :  { %s19_s19 = sshll.u32 %s1293_s18, 4  ;;  %p1246_p0 = scmp.ne.s32.totalorder %s1478_s1, %s1245_s22  ;;  %s20_s19 = int_to_ptr.vmem [resolvable:$true] %s19_s19 }
   0x3   :  { %p1249_p1 = scmp.lt.u32.totalorder %s1245_s22, %s1478_s1 }
   0x5   :  { %p1251_p2 = pnand %p1249_p1, %p1246_p0 }
   0x7   :  { %1254 = shalt.err (!%p1251_p2)
}
   0x8   :  { %s1255_s27 = scalar_lea.vmem %s20_s19, 12288  ;;  %p1260_p4 = scmp.lt.s32.totalorder %s20_s19, %s20_s19 }
   0x9   :  { %p1256_p3 = scmp.ne.s32.totalorder %s20_s19, %s1255_s27  ;;  %p1261_p5 = scmp.lt.s32.totalorder %s1255_s27, %s1255_s27 }
   0xb   :  { %p1262_p6 = por %p1261_p5, %p1260_p4 }
   0xd   :  { %p1263_p7 = pnand %p1262_p6, %p1256_p3 }
   0xf   :  { %1266 = shalt.err (!%p1263_p7)
}
  0x10   :  { %s1294_s28 = smov 128   ;;  %s1295_s29 = smov 8  }
  0x11   :  { %25 = dma.hbm_to_vmem [thread:$0]  %s1478_s1, 12288, %s20_s19, [#allocation3], %s1294_s28, %s1294_s28, %s1295_s29  }
  0x12   :  { %1289 = dma.done.wait [#allocation3], 12288  }
  0x13   :  { %1290 = vsyncadd [#allocation3], 4294955008  ;;  %v1091_v0 = vld [vmem:[#allocation2 + $0x104] ss:$8 sps:$4 sm:$0xff]   ;;  %v1093_v1 = vld [vmem:[#allocation2 + $0x100] ss:$8 sps:$4 sm:$0xff]  }
  0x14   :  { %688 = vmatprep.subr.bf16.mxu0 %v1091_v0  ;;  %v1094_v2 = vld [vmem:[#allocation2 + $0x114] ss:$8 sps:$4 sm:$0xff]   ;;  %v1096_v3 = vld [vmem:[#allocation2 + $0x110] ss:$8 sps:$4 sm:$0xff]   ;;  %v1097_v4 = vld [vmem:[#allocation2 + $0x124] ss:$8 sps:$4 sm:$0xff]  }
  0x15   :  { %689 = vmatpush1.bf16.msra.mxu0 %v1093_v1  ;;  %v1099_v5 = vld [vmem:[#allocation2 + $0x120] ss:$8 sps:$4 sm:$0xff]   ;;  %v1100_v6 = vld [vmem:[#allocation2 + $0x134] ss:$8 sps:$4 sm:$0xff]   ;;  %v1102_v7 = vld [vmem:[#allocation2 + $0x130] ss:$8 sps:$4 sm:$0xff]  }
  0x16   :  { %690 = vmatprep.subr.bf16.mxu0 %v1094_v2  ;;  %v1103_v8 = vld [vmem:[#allocation2 + $0x144] ss:$8 sps:$4 sm:$0xff]   ;;  %v1105_v9 = vld [vmem:[#allocation2 + $0x140] ss:$8 sps:$4 sm:$0xff]   ;;  %v1106_v10 = vld [vmem:[#allocation2 + $0x154] ss:$8 sps:$4 sm:$0xff]  }
  0x17   :  { %v1108_v11 = vld [vmem:[#allocation2 + $0x150] ss:$8 sps:$4 sm:$0xff]   ;;  %v1109_v12 = vld [vmem:[#allocation2 + $0x164] ss:$8 sps:$4 sm:$0xff]   ;;  %v1138_v14 = vld [vmem:[#allocation2] ss:$8 sps:$4 sm:$0xff]  }
  0x18   :  { %v1136_v13 = vld [vmem:[#allocation2 + $0x4] ss:$8 sps:$4 sm:$0xff]   ;;  %v1111_v15 = vld [vmem:[#allocation2 + $0x160] ss:$8 sps:$4 sm:$0xff]   ;;  %v1112_v16 = vld [vmem:[#allocation2 + $0x174] ss:$8 sps:$4 sm:$0xff]  }
  0x19   :  { %691 = vmatpush1.bf16.msra.mxu0 %v1096_v3  ;;  %647 = vmatprep.subr.bf16.mxu1 %v1136_v13  ;;  %v1142_v17 = vld [vmem:[#allocation2 + $0x14] ss:$8 sps:$4 sm:$0xff]   ;;  %v1144_v18 = vld [vmem:[#allocation2 + $0x10] ss:$8 sps:$4 sm:$0xff]   ;;  %v1342_v19 = vld [vmem:[%s1477_s0 + $0x8] sm:$0xff]  ;;  %vm881_vm0 = vcmask 80896  }
  0x1a   :  { %692 = vmatprep.subr.bf16.mxu0 %v1097_v4  ;;  %648 = vmatpush1.bf16.msra.mxu1 %v1138_v14  ;;  %v912_v20 = vcombine.high %v1342_v19, %v1342_v19  ;;  %v1114_v21 = vld [vmem:[#allocation2 + $0x170] ss:$8 sps:$4 sm:$0xff]   ;;  %v1150_v22 = vld [vmem:[#allocation2 + $0x24] ss:$8 sps:$4 sm:$0xff]   ;;  %v1152_v23 = vld [vmem:[#allocation2 + $0x20] ss:$8 sps:$4 sm:$0xff]   ;;  %v911_v58 = vcombine.low %v1342_v19, %v1342_v19 }
  0x1b   :  { %649 = vmatprep.subr.bf16.mxu1 %v1142_v17  ;;  %v1115_v24 = vld [vmem:[#allocation2 + $0x184] ss:$8 sps:$4 sm:$0xff]   ;;  %v1156_v25 = vld [vmem:[#allocation2 + $0x34] ss:$8 sps:$4 sm:$0xff]   ;;  %v1117_v26 = vld [vmem:[#allocation2 + $0x180] ss:$8 sps:$4 sm:$0xff]  }
  0x1c   :  { %720 = vmatprep.mubr.bf16.mxu0 %v912_v20  ;;  %v1118_v27 = vld [vmem:[#allocation2 + $0x194] ss:$8 sps:$4 sm:$0xff]   ;;  %v1158_v28 = vld [vmem:[#allocation2 + $0x30] ss:$8 sps:$4 sm:$0xff]   ;;  %v1162_v29 = vld [vmem:[#allocation2 + $0x44] ss:$8 sps:$4 sm:$0xff]  }
  0x1d   :  { %693 = vmatpush1.bf16.msra.mxu0 %v1099_v5  ;;  %v1120_v30 = vld [vmem:[#allocation2 + $0x190] ss:$8 sps:$4 sm:$0xff]   ;;  %v1121_v31 = vld [vmem:[#allocation2 + $0x1a4] ss:$8 sps:$4 sm:$0xff]   ;;  %v1164_v32 = vld [vmem:[#allocation2 + $0x40] ss:$8 sps:$4 sm:$0xff]  }
  0x1e   :  { %694 = vmatprep.subr.bf16.mxu0 %v1100_v6  ;;  %650 = vmatpush1.bf16.msra.mxu1 %v1144_v18  ;;  %v1168_v33 = vld [vmem:[#allocation2 + $0x54] ss:$8 sps:$4 sm:$0xff]   ;;  %v1123_v34 = vld [vmem:[#allocation2 + $0x1a0] ss:$8 sps:$4 sm:$0xff]   ;;  %v1170_v36 = vld [vmem:[#allocation2 + $0x50] ss:$8 sps:$4 sm:$0xff]  }
  0x1f   :  { %651 = vmatprep.subr.bf16.mxu1 %v1150_v22  ;;  %v1124_v35 = vld [vmem:[#allocation2 + $0x1b4] ss:$8 sps:$4 sm:$0xff]   ;;  %v1174_v37 = vld [vmem:[#allocation2 + $0x64] ss:$8 sps:$4 sm:$0xff]   ;;  %v1126_v38 = vld [vmem:[#allocation2 + $0x1b0] ss:$8 sps:$4 sm:$0xff]  }
  0x20   :  { %v1127_v39 = vld [vmem:[#allocation2 + $0x1c4] ss:$8 sps:$4 sm:$0xff]   ;;  %v1176_v40 = vld [vmem:[#allocation2 + $0x60] ss:$8 sps:$4 sm:$0xff]   ;;  %v1180_v41 = vld [vmem:[#allocation2 + $0x74] ss:$8 sps:$4 sm:$0xff]  }
  0x21   :  { %695 = vmatpush1.bf16.msra.mxu0 %v1102_v7  ;;  %v1129_v42 = vld [vmem:[#allocation2 + $0x1c0] ss:$8 sps:$4 sm:$0xff]   ;;  %v1130_v43 = vld [vmem:[#allocation2 + $0x1d4] ss:$8 sps:$4 sm:$0xff]   ;;  %v1182_v44 = vld [vmem:[#allocation2 + $0x70] ss:$8 sps:$4 sm:$0xff]  }
  0x22   :  { %696 = vmatprep.subr.bf16.mxu0 %v1103_v8  ;;  %652 = vmatpush1.bf16.msra.mxu1 %v1152_v23  ;;  %v1186_v45 = vld [vmem:[#allocation2 + $0x84] ss:$8 sps:$4 sm:$0xff]   ;;  %v1132_v46 = vld [vmem:[#allocation2 + $0x1d0] ss:$8 sps:$4 sm:$0xff]   ;;  %v1188_v48 = vld [vmem:[#allocation2 + $0x80] ss:$8 sps:$4 sm:$0xff]  }
  0x23   :  { %653 = vmatprep.subr.bf16.mxu1 %v1156_v25  ;;  %v1133_v47 = vld [vmem:[#allocation2 + $0x1e4] ss:$8 sps:$4 sm:$0xff]   ;;  %v1192_v49 = vld [vmem:[#allocation2 + $0x94] ss:$8 sps:$4 sm:$0xff]   ;;  %v1135_v50 = vld [vmem:[#allocation2 + $0x1e0] ss:$8 sps:$4 sm:$0xff]  }
  0x24   :  { %v1139_v51 = vld [vmem:[#allocation2 + $0x1f4] ss:$8 sps:$4 sm:$0xff]   ;;  %v1194_v52 = vld [vmem:[#allocation2 + $0x90] ss:$8 sps:$4 sm:$0xff]   ;;  %v1198_v53 = vld [vmem:[#allocation2 + $0xa4] ss:$8 sps:$4 sm:$0xff]  }
  0x25   :  { %697 = vmatpush1.bf16.msra.mxu0 %v1105_v9  ;;  %v1141_v54 = vld [vmem:[#allocation2 + $0x1f0] ss:$8 sps:$4 sm:$0xff]   ;;  %v1149_v55 = vld [vmem:[#allocation2 + $0x204] ss:$8 sps:$4 sm:$0xff]   ;;  %v1200_v56 = vld [vmem:[#allocation2 + $0xa0] ss:$8 sps:$4 sm:$0xff]  }
  0x26   :  { %698 = vmatprep.subr.bf16.mxu0 %v1106_v10  ;;  %654 = vmatpush1.bf16.msra.mxu1 %v1158_v28  ;;  %v1204_v57 = vld [vmem:[#allocation2 + $0xb4] ss:$8 sps:$4 sm:$0xff]   ;;  %v1147_v59 = vld [vmem:[#allocation2 + $0x200] ss:$8 sps:$4 sm:$0xff]   ;;  %v1206_v60 = vld [vmem:[#allocation2 + $0xb0] ss:$8 sps:$4 sm:$0xff]  }
  0x27   :  { %655 = vmatprep.subr.bf16.mxu1 %v1162_v29  ;;  %v35_v61 = vld [vmem:[%s1477_s0] sm:$0xff]  ;;  %v1155_v62 = vld [vmem:[#allocation2 + $0x214] ss:$8 sps:$4 sm:$0xff]   ;;  %v1153_v3 = vld [vmem:[#allocation2 + $0x210] ss:$8 sps:$4 sm:$0xff]  }
  0x28   :  { %v1210_v63 = vld [vmem:[#allocation2 + $0xc4] ss:$8 sps:$4 sm:$0xff]   ;;  %v910_v0 = vcombine.high %v35_v61, %v35_v61  ;;  %v1354_v1 = vld [vmem:[%s1477_s0 + $0x10] sm:$0xff]  ;;  %v1212_v4 = vld [vmem:[#allocation2 + $0xc0] ss:$8 sps:$4 sm:$0xff]   ;;  %v909_v25 = vcombine.low %v35_v61, %v35_v61 }
  0x29   :  { %699 = vmatpush1.bf16.msra.mxu0 %v1108_v11  ;;  %v914_v2 = vcombine.high %v1354_v1, %v1354_v1  ;;  %v1161_v5 = vld [vmem:[#allocation2 + $0x224] ss:$8 sps:$4 sm:$0xff]   ;;  %v1216_v6 = vld [vmem:[#allocation2 + $0xd4] ss:$8 sps:$4 sm:$0xff]   ;;  %v1159_v7 = vld [vmem:[#allocation2 + $0x220] ss:$8 sps:$4 sm:$0xff]  }
  0x2a   :  { %700 = vmatprep.subr.bf16.mxu0 %v1109_v12  ;;  %656 = vmatpush1.bf16.msra.mxu1 %v1164_v32  ;;  %v1218_v8 = vld [vmem:[#allocation2 + $0xd0] ss:$8 sps:$4 sm:$0xff]   ;;  %v1167_v9 = vld [vmem:[#allocation2 + $0x234] ss:$8 sps:$4 sm:$0xff]   ;;  %v1222_v10 = vld [vmem:[#allocation2 + $0xe4] ss:$8 sps:$4 sm:$0xff]  }
  0x2b   :  { %657 = vmatprep.subr.bf16.mxu1 %v1168_v33  ;;  %679 = vmatprep.mubr.bf16.mxu1 %v910_v0  ;;  %v1165_v11 = vld [vmem:[#allocation2 + $0x230] ss:$8 sps:$4 sm:$0xff]   ;;  %v1224_v12 = vld [vmem:[#allocation2 + $0xe0] ss:$8 sps:$4 sm:$0xff]   ;;  %v1173_v13 = vld [vmem:[#allocation2 + $0x244] ss:$8 sps:$4 sm:$0xff]  }
  0x2c   :  { %v1228_v14 = vld [vmem:[#allocation2 + $0xf4] ss:$8 sps:$4 sm:$0xff]   ;;  %v1171_v17 = vld [vmem:[#allocation2 + $0x240] ss:$8 sps:$4 sm:$0xff]   ;;  %v1230_v18 = vld [vmem:[#allocation2 + $0xf0] ss:$8 sps:$4 sm:$0xff]  }
  0x2d   :  { %701 = vmatpush1.bf16.msra.mxu0 %v1111_v15  ;;  %v788_v15 = vld [vmem:[%s1480_s3 + $0x80] sm:$0xff]  ;;  %v1179_v19 = vld [vmem:[#allocation2 + $0x254] ss:$8 sps:$4 sm:$0xff]   ;;  %v773_v22 = vld [vmem:[%s1480_s3 + $0x8] sm:$0xff] }
  0x2e   :  { %702 = vmatprep.subr.bf16.mxu0 %v1112_v16  ;;  %658 = vmatpush1.bf16.msra.mxu1 %v1170_v36  ;;  %v789_v16 = vld [vmem:[%s1480_s3 + $0x88] sm:$0xff]  ;;  %v790_v23 = vld [vmem:[%s1480_s3 + $0x90] sm:$0xff]  ;;  %v792_v32 = vld [vmem:[%s1480_s3 + $0xa0] sm:$0xff] }
  0x2f   :  { %659 = vmatprep.subr.bf16.mxu1 %v1174_v37  ;;  %v1047_v20 = vpack.c.bf16 %v789_v16, %v788_v15  ;;  %v1185_v28 = vld [vmem:[#allocation2 + $0x264] ss:$8 sps:$4 sm:$0xff]   ;;  %v1191_v36 = vld [vmem:[#allocation2 + $0x274] ss:$8 sps:$4 sm:$0xff]   ;;  %v1213_v61 = vld [vmem:[#allocation2 + $0x2b0] ss:$8 sps:$4 sm:$0xff]  }
  0x30   :  { %v793_v33 = vld [vmem:[%s1480_s3 + $0xa8] sm:$0xff]  ;;  %v1227_v0 = vld [vmem:[#allocation2 + $0x2d4] ss:$8 sps:$4 sm:$0xff]   ;;  %v784_v16 = vld [vmem:[%s1480_s3 + $0x60] sm:$0xff] }
  0x31   :  { %703 = vmatpush1.bf16.msra.mxu0 %v1114_v21  ;;  %v772_v21 = vld [vmem:[%s1480_s3] sm:$0xff]  ;;  %v1055_v37 = vpack.c.bf16 %v793_v33, %v792_v32 }
  0x32   :  { %704 = vmatprep.subr.bf16.mxu0 %v1115_v24  ;;  %660 = vmatpush1.bf16.msra.mxu1 %v1176_v40  ;;  %v791_v24 = vld [vmem:[%s1480_s3 + $0x98] sm:$0xff]  ;;  %v794_v40 = vld [vmem:[%s1480_s3 + $0xb0] sm:$0xff]  ;;  %v134_v32 = vld [vmem:[%s1479_s2] sm:$0x3]  ;;  %s1296_s2 = smov [#allocation5]  }
  0x33   :  { %661 = vmatprep.subr.bf16.mxu1 %v1180_v41  ;;  %v1051_v29 = vpack.c.bf16 %v791_v24, %v790_v23  ;;  %v795_v41 = vld [vmem:[%s1480_s3 + $0xb8] sm:$0xff]  ;;  %s900_s24 = sshll.u32 %s1296_s2, 4  ;;  %s901_s24 = int_to_ptr.vmem [resolvable:$true] %s900_s24 }
  0x34   :  { %v787_v23 = vld [vmem:[%s1480_s3 + $0x78] sm:$0xff]  ;;  %p1272_p9 = scmp.lt.s32.totalorder %s901_s24, %s901_s24 }
  0x35   :  { %705 = vmatpush1.bf16.msra.mxu0 %v1117_v26  ;;  %v1177_v26 = vld [vmem:[#allocation2 + $0x250] ss:$8 sps:$4 sm:$0xff]  }
  0x36   :  { %706 = vmatprep.subr.bf16.mxu0 %v1118_v27  ;;  %662 = vmatpush1.bf16.msra.mxu1 %v1182_v44  ;;  %v1049_v27 = vpack.c.bf16 %v773_v22, %v772_v21  ;;  %v1197_v44 = vld [vmem:[#allocation2 + $0x284] ss:$8 sps:$4 sm:$0xff]   ;;  %v786_v22 = vld [vmem:[%s1480_s3 + $0x70] sm:$0xff] }
  0x37   :  { %663 = vmatprep.subr.bf16.mxu1 %v1186_v45  ;;  %v1059_v45 = vpack.c.bf16 %v795_v41, %v794_v40  ;;  %v1077_v24 = vpack.c.bf16 %v787_v23, %v786_v22 }
  0x39   :  { %707 = vmatpush1.bf16.msra.mxu0 %v1120_v30  ;;  %v774_v30 = vld [vmem:[%s1480_s3 + $0x10] sm:$0xff] }
  0x3a   :  { %708 = vmatprep.subr.bf16.mxu0 %v1121_v31  ;;  %664 = vmatpush1.bf16.msra.mxu1 %v1188_v48  ;;  %v775_v31 = vld [vmem:[%s1480_s3 + $0x18] sm:$0xff]  ;;  %v796_v48 = vld [vmem:[%s1480_s3 + $0xc0] sm:$0xff] }
  0x3b   :  { %665 = vmatprep.subr.bf16.mxu1 %v1192_v49  ;;  %v797_v49 = vld [vmem:[%s1480_s3 + $0xc8] sm:$0xff] }
  0x3d   :  { %709 = vmatpush1.bf16.msra.mxu0 %v1123_v34  ;;  %v1183_v34 = vld [vmem:[#allocation2 + $0x260] ss:$8 sps:$4 sm:$0xff]  }
  0x3e   :  { %710 = vmatprep.subr.bf16.mxu0 %v1124_v35  ;;  %666 = vmatpush1.bf16.msra.mxu1 %v1194_v52  ;;  %v1053_v35 = vpack.c.bf16 %v775_v31, %v774_v30  ;;  %v1203_v52 = vld [vmem:[#allocation2 + $0x294] ss:$8 sps:$4 sm:$0xff]  }
  0x3f   :  { %667 = vmatprep.subr.bf16.mxu1 %v1198_v53  ;;  %v1063_v53 = vpack.c.bf16 %v797_v49, %v796_v48  ;;  %v1011_v48 = vld [vmem:[%s1481_s4] ss:$0 sm:$0xff]  ;;  %s1267_s4 = scalar_lea.vmem %s901_s24, 128 }
  0x40   :  { %p1268_p8 = scmp.ne.s32.totalorder %s901_s24, %s1267_s4  ;;  %p1273_p10 = scmp.lt.s32.totalorder %s1267_s4, %s1267_s4 }
  0x41   :  { %711 = vmatpush1.bf16.msra.mxu0 %v1126_v38  ;;  %v776_v38 = vld [vmem:[%s1480_s3 + $0x20] sm:$0xff] }
  0x42   :  { %712 = vmatprep.subr.bf16.mxu0 %v1127_v39  ;;  %668 = vmatpush1.bf16.msra.mxu1 %v1200_v56  ;;  %v777_v39 = vld [vmem:[%s1480_s3 + $0x28] sm:$0xff]  ;;  %v1201_v56 = vld [vmem:[#allocation2 + $0x290] ss:$8 sps:$4 sm:$0xff]   ;;  %p1274_p11 = por %p1273_p10, %p1272_p9 }
  0x43   :  { %669 = vmatprep.subr.bf16.mxu1 %v1204_v57 }
  0x44   :  { %p1275_p12 = pnand %p1274_p11, %p1268_p8 }
  0x45   :  { %713 = vmatpush1.bf16.msra.mxu0 %v1129_v42  ;;  %v1189_v42 = vld [vmem:[#allocation2 + $0x270] ss:$8 sps:$4 sm:$0xff]  }
  0x46   :  { %714 = vmatprep.subr.bf16.mxu0 %v1130_v43  ;;  %670 = vmatpush1.bf16.msra.mxu1 %v1206_v60  ;;  %v1057_v43 = vpack.c.bf16 %v777_v39, %v776_v38  ;;  %v1215_v60 = vld [vmem:[#allocation2 + $0x2b4] ss:$8 sps:$4 sm:$0xff]  }
  0x47   :  { %671 = vmatprep.subr.bf16.mxu1 %v1210_v63  ;;  %v1219_v63 = vld [vmem:[#allocation2 + $0x2c0] ss:$8 sps:$4 sm:$0xff]  }
  0x49   :  { %715 = vmatpush1.bf16.msra.mxu0 %v1132_v46  ;;  %v778_v46 = vld [vmem:[%s1480_s3 + $0x30] sm:$0xff] }
  0x4a   :  { %716 = vmatprep.subr.bf16.mxu0 %v1133_v47  ;;  %672 = vmatpush1.bf16.msra.mxu1 %v1212_v4  ;;  %v779_v47 = vld [vmem:[%s1480_s3 + $0x38] sm:$0xff]  ;;  %v1231_v4 = vld [vmem:[#allocation2 + $0x2e0] ss:$8 sps:$4 sm:$0xff]  }
  0x4b   :  { %673 = vmatprep.subr.bf16.mxu1 %v1216_v6  ;;  %v1236_v6 = vld [vmem:[#allocation2 + $0x2f0] ss:$8 sps:$4 sm:$0xff]  }
  0x4d   :  { %717 = vmatpush1.bf16.msra.mxu0 %v1135_v50  ;;  %v1195_v50 = vld [vmem:[#allocation2 + $0x280] ss:$8 sps:$4 sm:$0xff]  }
  0x4e   :  { %718 = vmatprep.subr.bf16.mxu0 %v1139_v51  ;;  %674 = vmatpush1.bf16.msra.mxu1 %v1218_v8  ;;  %v1061_v51 = vpack.c.bf16 %v779_v47, %v778_v46  ;;  %v798_v8 = vld [vmem:[%s1480_s3 + $0xd0] sm:$0xff] }
  0x4f   :  { %675 = vmatprep.subr.bf16.mxu1 %v1222_v10 }
  0x51   :  { %719 = vmatpush1.bf16.msra.mxu0 %v1141_v54  ;;  %v780_v54 = vld [vmem:[%s1480_s3 + $0x40] sm:$0xff] }
  0x52   :  { %729 = vmatprep.subr.bf16.mxu0 %v1149_v55  ;;  %676 = vmatpush1.bf16.msra.mxu1 %v1224_v12  ;;  %v781_v55 = vld [vmem:[%s1480_s3 + $0x48] sm:$0xff]  ;;  %v783_v12 = vld [vmem:[%s1480_s3 + $0x58] sm:$0xff] }
  0x53   :  { %677 = vmatprep.subr.bf16.mxu1 %v1228_v14  ;;  %v1065_v57 = vpack.c.bf16 %v781_v55, %v780_v54  ;;  %v801_v14 = vld [vmem:[%s1480_s3 + $0xe8] sm:$0xff] }
  0x54   :  { %721 = vmatmul.mubr.bf16.vlgmr.msra.gmra.mrb[0].mxu0 %v911_v58  ;;  %v1209_v58 = vld [vmem:[#allocation2 + $0x2a4] ss:$8 sps:$4 sm:$0xff]  }
  0x55   :  { %730 = vmatpush1.bf16.msra.mxu0 %v1147_v59  ;;  %761 = vmatprep.mubr.bf16.mxu0 %v914_v2  ;;  %v1207_v59 = vld [vmem:[#allocation2 + $0x2a0] ss:$8 sps:$4 sm:$0xff]   ;;  %v1225_v2 = vld [vmem:[#allocation2 + $0x2d0] ss:$8 sps:$4 sm:$0xff]  }
  0x56   :  { %731 = vmatprep.subr.bf16.mxu0 %v1155_v62  ;;  %678 = vmatpush1.bf16.msra.mxu1 %v1230_v18  ;;  %v1221_v62 = vld [vmem:[#allocation2 + $0x2c4] ss:$8 sps:$4 sm:$0xff]  }
  0x57   :  { %1048 = vmatprep.subr.bf16.mxu1 %v1047_v20  ;;  %v803_v20 = vld [vmem:[%s1480_s3 + $0xf8] sm:$0xff] }
  0x59   :  { %732 = vmatpush1.bf16.msra.mxu0 %v1153_v3  ;;  %680 = vmatmul.mubr.bf16.vlgmr.msra.gmra.mrb[0].mxu1 %v909_v25  ;;  %v1233_v3 = vld [vmem:[#allocation2 + $0x2e4] ss:$8 sps:$4 sm:$0xff]  }
  0x5a   :  { %733 = vmatprep.subr.bf16.mxu0 %v1161_v5  ;;  %1050 = vmatpush3.bf16.msra.mxu1 %v1049_v27  ;;  %v1238_v5 = vld [vmem:[#allocation2 + $0x2f4] ss:$8 sps:$4 sm:$0xff]  }
  0x5b   :  { %1052 = vmatprep.subr.bf16.mxu1 %v1051_v29  ;;  %v136_v29 = vlaneseq }
  0x5d   :  { %734 = vmatpush1.bf16.msra.mxu0 %v1159_v7  ;;  %v913_v7 = vcombine.low %v1354_v1, %v1354_v1  ;;  %v137_v30 = vshrl.u32 %v136_v29, 7 }
  0x5e   :  { %735 = vmatprep.subr.bf16.mxu0 %v1167_v9  ;;  %1054 = vmatpush3.bf16.msra.mxu1 %v1053_v35  ;;  %v799_v9 = vld [vmem:[%s1480_s3 + $0xd8] sm:$0xff] }
  0x5f   :  { %1056 = vmatprep.subr.bf16.mxu1 %v1055_v37  ;;  %v1067_v10 = vpack.c.bf16 %v799_v9, %v798_v8  ;;  %v138_v31 = vsub.s32 0, %v137_v30  ;;  %v142_v33 = vsub.s32 1, %v137_v30 }
  0x61   :  { %736 = vmatpush1.bf16.msra.mxu0 %v1165_v11  ;;  %v782_v11 = vld [vmem:[%s1480_s3 + $0x50] sm:$0xff]  ;;  %v143_v35 = vrot.slane %v134_v32, %v142_v33 }
  0x62   :  { %737 = vmatprep.subr.bf16.mxu0 %v1173_v13  ;;  %1058 = vmatpush3.bf16.msra.mxu1 %v1057_v43  ;;  %v1069_v1 = vpack.c.bf16 %v783_v12, %v782_v11  ;;  %v800_v13 = vld [vmem:[%s1480_s3 + $0xe0] sm:$0xff] }
  0x63   :  { %1060 = vmatprep.subr.bf16.mxu1 %v1059_v45  ;;  %v1071_v15 = vpack.c.bf16 %v801_v14, %v800_v13 }
  0x65   :  { %738 = vmatpush1.bf16.msra.mxu0 %v1171_v17  ;;  %v785_v17 = vld [vmem:[%s1480_s3 + $0x68] sm:$0xff] }
  0x66   :  { %739 = vmatprep.subr.bf16.mxu0 %v1179_v19  ;;  %1062 = vmatpush3.bf16.msra.mxu1 %v1061_v51  ;;  %v1073_v18 = vpack.c.bf16 %v785_v17, %v784_v16  ;;  %v802_v19 = vld [vmem:[%s1480_s3 + $0xf0] sm:$0xff] }
  0x67   :  { %1064 = vmatprep.subr.bf16.mxu1 %v1063_v53  ;;  %v1075_v21 = vpack.c.bf16 %v803_v20, %v802_v19 }
  0x69   :  { %740 = vmatpush1.bf16.msra.mxu0 %v1177_v26 }
  0x6a   :  { %741 = vmatprep.subr.bf16.mxu0 %v1185_v28  ;;  %1066 = vmatpush3.bf16.msra.mxu1 %v1065_v57 }
  0x6b   :  { %1068 = vmatprep.subr.bf16.mxu1 %v1067_v10 }
  0x6d   :  { %742 = vmatpush1.bf16.msra.mxu0 %v1183_v34  ;;  %v139_v34 = vrot.slane %v134_v32, %v138_v31 }
  0x6e   :  { %743 = vmatprep.subr.bf16.mxu0 %v1191_v36  ;;  %1070 = vmatpush3.bf16.msra.mxu1 %v1069_v1 }
  0x6f   :  { %1072 = vmatprep.subr.bf16.mxu1 %v1071_v15 }
  0x71   :  { %744 = vmatpush1.bf16.msra.mxu0 %v1189_v42 }
  0x72   :  { %745 = vmatprep.subr.bf16.mxu0 %v1197_v44  ;;  %1074 = vmatpush3.bf16.msra.mxu1 %v1073_v18 }
  0x73   :  { %1076 = vmatprep.subr.bf16.mxu1 %v1075_v21 }
  0x75   :  { %746 = vmatpush1.bf16.msra.mxu0 %v1195_v50 }
  0x76   :  { %747 = vmatprep.subr.bf16.mxu0 %v1203_v52  ;;  %1078 = vmatpush3.bf16.msra.mxu1 %v1077_v24 }
  0x79   :  { %748 = vmatpush1.bf16.msra.mxu0 %v1201_v56 }
  0x7a   :  { %749 = vmatprep.subr.bf16.mxu0 %v1209_v58 }
  0x7d   :  { %750 = vmatpush1.bf16.msra.mxu0 %v1207_v59 }
  0x7e   :  { %751 = vmatprep.subr.bf16.mxu0 %v1215_v60 }
  0x81   :  { %752 = vmatpush1.bf16.msra.mxu0 %v1213_v61 }
  0x82   :  { %753 = vmatprep.subr.bf16.mxu0 %v1221_v62 }
  0x85   :  { %754 = vmatpush1.bf16.msra.mxu0 %v1219_v63 }
  0x86   :  { %755 = vmatprep.subr.bf16.mxu0 %v1227_v0 }
  0x89   :  { %756 = vmatpush1.bf16.msra.mxu0 %v1225_v2 }
  0x8a   :  { %757 = vmatprep.subr.bf16.mxu0 %v1233_v3 }
  0x8d   :  { %758 = vmatpush1.bf16.msra.mxu0 %v1231_v4 }
  0x8e   :  { %759 = vmatprep.subr.bf16.mxu0 %v1238_v5 }
  0x91   :  { %760 = vmatpush1.bf16.msra.mxu0 %v1236_v6 }
  0x94   :  { %762 = vmatmul.mubr.bf16.vlgmr.msra.gmra.mrb[0].mxu0 %v913_v7 }
 0x12c   :  { %v681_v25 = vpop.f32.mrb[0].mxu1 }
 0x12d   :  { %v683_v26 = vpop.f32.mrb[1].mxu1  ;;  %v682_v36 = vadd.f32 %v681_v25, %v139_v34 }
 0x12e   :  { %v685_v27 = vpop.f32.mrb[2].mxu1  ;;  %v684_v37 = vadd.f32 %v683_v26, %v143_v35 }
 0x12f   :  { %v686_v28 = vpop.f32.mrb[3].mxu1 }
 0x167   :  { %v763_v38 = vpop.f32.mrb[0].mxu0 }
 0x168   :  { %v1080_v39 = vadd.f32 %v763_v38, %v682_v36  ;;  %v765_v40 = vpop.f32.mrb[1].mxu0 }
 0x169   :  { %v1082_v41 = vadd.f32 %v765_v40, %v684_v37  ;;  %v767_v42 = vpop.f32.mrb[2].mxu0 }
 0x16a   :  { %v768_v43 = vpop.f32.mrb[3].mxu0  ;;  %v770_v45 = vmax.f32 %v1080_v39, 0.0 }
 0x16b   :  { %v771_v44 = vmax.f32 %v1082_v41, 0.0 }
 0x16d   :  { %875 = vmatprep.mubr.f32.mxu1 %v771_v44 }
 0x16e   :  { %876 = vmatmul.mubr.f32.vlgmr.msra.gmra.mrb[4].mxu1 %v770_v45 }
 0x241   :  { %v1044_v46 = vpop.f32.mrb[4].mxu1 }
 0x242   :  { %v1045_v47 = vpop.f32.mrb[5].mxu1 }
 0x243   :  { %v1046_v49 = vadd.f32 %v1045_v47, %v1044_v46 }
 0x245   :  { %v878_v50 = vadd.f32 %v1046_v49, %v1011_v48 }
 0x247   :  { %v882_v51 = vsel %vm881_vm0, %v878_v50, -inf }
 0x248   :  { %883 = vmax.xlane.f32.xlu0 %v882_v51 }
 0x2d5   :  { %v884_v52 = vpop.xlane.xlu0 %883 }
 0x2d6   :  { %v885_v53 = vsub.f32 %v878_v50, %v884_v52 }
 0x2d8   :  { %v886_v54 = vmul.f32 1.442695, %v885_v53 }
 0x2da   :  { %1241 = vpow2.f32 %v886_v54 }
 0x2e4   :  { %v1242_v55 = vpop.eup %1241 }
 0x2e5   :  { %v888_v56 = vsel %vm881_vm0, %v1242_v55, 0.0 }
 0x2e6   :  { %889 = vadd.xlane.f32.xlu0 %v888_v56 }
 0x373   :  { %v890_v57 = vpop.xlane.xlu0 %889 }
 0x374   :  { %1243 = vrcp.f32 %v890_v57 }
 0x37e   :  { %v1244_v58 = vpop.eup %1243 }
 0x37f   :  { %v892_v59 = vmul.f32 %v1244_v58, %v1242_v55 }
 0x381   :  { %893 = vst.msk [vmem:[#allocation5] sm:$0xff] %vm881_vm0, %v892_v59 }
 0x382   :  { %1278 = shalt.err (!%p1275_p12)
}
 0x383   :  { %s1279_s27 = scalar_lea.hbm %s1482_s5, 128 }
 0x384   :  { %p1280_p13 = scmp.ne.s32.totalorder %s1482_s5, %s1279_s27  ;;  %p1283_p0 = scmp.lt.u32.totalorder %s1279_s27, %s1482_s5 }
 0x386   :  { %p1285_p1 = pnand %p1283_p0, %p1280_p13 }
 0x388   :  { %1288 = shalt.err (!%p1285_p1)
}
 0x389   :  { %903 = dma.vmem_to_hbm [thread:$0]  %s901_s24, 128, %s1482_s5, [#allocation4]  }
 0x38a   :  { %1291 = dma.done.wait [#allocation4], 128  }
 0x38b   :  { %1292 = vsyncadd [#allocation4], 4294967168 }
 0x38c   :  { %907 = vsyncpa [#allocation3], 1 }
 0x38d   :  { %908 = vsyncpa [#allocation4], 1 }

</bundles_post_ra>
